<compile_context>
chip_gen: v5e
topology: v5e:2x2
jax: 0.10.0
libtpu: 0.0.40
codegen_flags: <defaults>
</compile_context>

<pallas_src>
import functools
import math

import jax
import jax.numpy as jnp
from jax.experimental import pallas as pl
from jax.experimental.pallas import tpu as pltpu

# Older JAX releases expose this class under a different name.
_CompilerParams = getattr(pltpu, "CompilerParams", None) or getattr(pltpu, "TPUCompilerParams")


def _round_up(x, m):
    return -(-x // m) * m


def _row_tiling(m_rows):
    """Row-tile size (multiple of 8, capped at 256) and number of grid steps.

    Uses >=2 tiles whenever there are >=16 rows so a "parallel" grid puts work on
    both TensorCores (v7x megacore); large inputs fall back to 256-row tiles.
    """
    half = _round_up(max(1, -(-m_rows // 2)), 8)
    tm = min(256, half)
    n_tiles = -(-m_rows // tm)
    return tm, n_tiles


def _urt_kernel(q_ref, w_ref, b_ref, sel_ref, out_ref, *,
                n_extractors, hid_dim, temp, att, fea_dim, out_pad):
    # q_ref:   (TM, E*F)          row tile of flattened cat_proto (rows = batch*class)
    # w_ref:   (E*F, 2*E*H)       fused [block_diag(wk) | tile(wq)]   (VMEM resident)
    # b_ref:   (1,   2*E*H)       fused [tile(bk) | tile(bq)]         (VMEM resident)
    # sel_ref: (E*H, out_pad)     0/1 group selector (cols >= E all zero, resident)
    # out_ref: (TM, out_pad)      lane-dense padded softmax scores
    E, H = n_extractors, hid_dim
    TM = q_ref.shape[0]

    # Single fused projection on the MXU: one K = E*F contraction for both Linears.
    emb = jnp.dot(q_ref[...], w_ref[...],
                  preferred_element_type=jnp.float32) + b_ref[...]        # (TM, 2*E*H) f32
    k_flat = emb[:, : E * H]      # k_emb laid out (TM, E, H), vreg aligned
    q_tiled = emb[:, E * H:]      # q_emb tiled E times along lanes, vreg aligned

    sel = sel_ref[...]            # (E*H, out_pad)
    col = jax.lax.broadcasted_iota(jnp.int32, (TM, out_pad), 1)

    if att == "cosine":
        eps = 1e-8
        # One selector matmul for all three segmented reductions: stack the
        # products along the sublane axis -> (3*TM, E*H) @ (E*H, out_pad).
        stacked = jnp.concatenate(
            [q_tiled * k_flat, k_flat * k_flat, q_tiled * q_tiled], axis=0)
        red = jnp.dot(stacked.astype(sel.dtype), sel,
                      preferred_element_type=jnp.float32)                 # (3*TM, out_pad)
        dots = red[:TM]
        ksq = red[TM:2 * TM]
        qsq = red[2 * TM:]
        # max(||x||, eps) == sqrt(max(||x||^2, eps^2)); rsqrt lands on the EUP.
        raw = dots * jax.lax.rsqrt(jnp.maximum(qsq, eps * eps)) \
                   * jax.lax.rsqrt(jnp.maximum(ksq, eps * eps))
        # |cosine| <= 1  =>  |temp*raw| <= |temp|: exp cannot overflow, so skip the
        # max-subtraction (saves a cross-lane reduce); zero the padding lanes so
        # they contribute exactly 0 to the softmax denominator.
        e = jnp.where(col < E, jnp.exp(temp * raw), 0.0)
    elif att == "dotproduct":
        dots = jnp.dot((q_tiled * k_flat).astype(sel.dtype), sel,
                       preferred_element_type=jnp.float32)                # (TM, out_pad)
        raw = dots * (1.0 / math.sqrt(fea_dim))
        s = jnp.where(col < E, temp * raw, -jnp.inf)
        s = s - jnp.max(s, axis=-1, keepdims=True)
        e = jnp.exp(s)
    else:
        raise ValueError(f"invalid att type : {att}")

    # Exact reciprocal (not approx): rows sum to 1 to f32 precision; the kernel is
    # nowhere near EUP-bound so this costs nothing.
    p = e * pl.reciprocal(jnp.sum(e, axis=-1, keepdims=True), approx=False)
    out_ref[...] = p.astype(out_ref.dtype)


class URTPropagationPallas:
    """JAX/Pallas port of URTPropagation (forward pass only)."""

    def __init__(self, key_dim, query_dim, hid_dim, temp=1.0, att="cosine",
                 seed=0, mxu_dtype=jnp.float32):
        assert query_dim % key_dim == 0, "query_dim must be n_extractors * key_dim"
        self.key_dim = key_dim
        self.query_dim = query_dim
        self.hid_dim = hid_dim
        self.n_extractors = query_dim // key_dim
        self.temp = float(temp)
        self.att = att
        self.mxu_dtype = mxu_dtype

        E, F, H = self.n_extractors, key_dim, hid_dim

        kq_w, kq_b, kk_w, kk_b = jax.random.split(jax.random.PRNGKey(seed), 4)
        # nn.Linear weights re-initialized to normal(0, 0.001); stored transposed (in, out).
        self.wq = (0.001 * jax.random.normal(kq_w, (query_dim, hid_dim))).astype(jnp.float32)
        self.wk = (0.001 * jax.random.normal(kk_w, (key_dim, hid_dim))).astype(jnp.float32)
        # Biases keep PyTorch's default uniform(-1/sqrt(fan_in), 1/sqrt(fan_in)) init.
        bq_bound = 1.0 / math.sqrt(query_dim)
        bk_bound = 1.0 / math.sqrt(key_dim)
        self.bq = jax.random.uniform(kq_b, (1, hid_dim), jnp.float32, -bq_bound, bq_bound)
        self.bk = jax.random.uniform(kk_b, (1, hid_dim), jnp.float32, -bk_bound, bk_bound)
        # Unused by forward(); kept for parameter-shape fidelity.
        self.linear_v_w = jnp.tile(jnp.eye(key_dim, dtype=jnp.float32)[None], (8, 1, 1))

        # ---- fused operands for the kernel, precomputed once host-side ----
        wk_blockdiag = jnp.kron(jnp.eye(E, dtype=jnp.float32), self.wk)        # (E*F, E*H)
        self.w_fused = jnp.concatenate(
            [wk_blockdiag, jnp.tile(self.wq, (1, E))], axis=1).astype(mxu_dtype)  # (E*F, 2*E*H)
        self.b_fused = jnp.concatenate(
            [jnp.tile(self.bk, (1, E)), jnp.tile(self.bq, (1, E))], axis=1)    # (1, 2*E*H) f32
        # Lane-dense 0/1 selector: column e sums hidden group e; columns >= E stay 0.
        self.out_pad = 128 * max(1, -(-E // 128))
        group = jnp.arange(E * H, dtype=jnp.int32) // H
        cols = jnp.arange(self.out_pad, dtype=jnp.int32)
        self.sel = (group[:, None] == cols[None, :]).astype(mxu_dtype)         # (E*H, out_pad)

    def __call__(self, cat_proto):
        # Accepts (C, E, F) like the PyTorch module, or a batched (B, C, E, F).
        squeeze = (cat_proto.ndim == 3)
        if squeeze:
            cat_proto = cat_proto[None]
        B, C, E, F = cat_proto.shape
        assert F == self.key_dim
        assert E == self.n_extractors and E * F == self.query_dim

        H = self.hid_dim
        EF, EH, out_pad = E * F, E * H, self.out_pad

        # Fold batch x class into one row axis: every per-row op is independent,
        # so this is a pure re-tiling that amortizes grid-step overhead and feeds
        # the MXU tall LHS tiles.
        M = B * C
        q = cat_proto.reshape(M, EF).astype(self.mxu_dtype)

        tm, n_tiles = _row_tiling(M)
        m_pad = tm * n_tiles
        if m_pad != M:
            # Zero rows are harmless: they produce finite scores and are sliced off.
            q = jnp.pad(q, ((0, m_pad - M), (0, 0)))

        kernel = functools.partial(
            _urt_kernel, n_extractors=E, hid_dim=H, temp=self.temp,
            att=self.att, fea_dim=F, out_pad=out_pad)

        padded = pl.pallas_call(
            kernel,
            out_shape=jax.ShapeDtypeStruct((m_pad, out_pad), jnp.float32),
            grid=(n_tiles,),
            in_specs=[
                pl.BlockSpec((tm, EF), lambda i: (i, 0)),          # per-tile rows
                pl.BlockSpec((EF, 2 * EH), lambda i: (0, 0)),      # resident weight
                pl.BlockSpec((1, 2 * EH), lambda i: (0, 0)),       # resident bias
                pl.BlockSpec((EH, out_pad), lambda i: (0, 0)),     # resident selector
            ],
            out_specs=pl.BlockSpec((tm, out_pad), lambda i: (i, 0)),
            compiler_params=_CompilerParams(dimension_semantics=("parallel",)),
        )(q, self.w_fused, self.b_fused, self.sel)

        # Host-side slice back to (..., E).  If the consumer accepts the padded
        # lane-dense (..., 128) layout, this slice can be skipped / fused there.
        score = padded[:M, :E].reshape(B, C, E)
        return score[0] if squeeze else score


def _reference_forward(mod, cat_proto):
    """Pure-JAX reference matching the PyTorch semantics (supports leading batch dims)."""
    *lead, n_class, n_extractors, fea_dim = cat_proto.shape
    q = cat_proto.reshape(*lead, n_class, n_extractors * fea_dim)
    q_emb = q @ mod.wq + mod.bq[0]                                   # (..., C, H)
    k_emb = cat_proto @ mod.wk + mod.bk[0]                           # (..., C, E, H)
    if mod.att == "cosine":
        eps = 1e-8
        qn = jnp.maximum(jnp.linalg.norm(q_emb, axis=-1, keepdims=True), eps)  # (...,C,1)
        kn = jnp.maximum(jnp.linalg.norm(k_emb, axis=-1), eps)                 # (...,C,E)
        raw = jnp.sum(q_emb[..., None, :] * k_emb, axis=-1) / (qn * kn)
    else:
        raw = jnp.sum(q_emb[..., None, :] * k_emb, axis=-1) / math.sqrt(fea_dim)
    return jax.nn.softmax(mod.temp * raw, axis=-1)


if __name__ == "__main__":
    # Shapes implied by the module: cat_proto is (n_class, n_extractors, fea_dim),
    # query_dim = n_extractors * fea_dim, key_dim = fea_dim.  Batched over tasks.
    batch, n_class, n_extractors, fea_dim, hid_dim = 4, 8, 8, 32, 32

    key = jax.random.PRNGKey(0)
    cat_proto = jax.random.normal(key, (batch, n_class, n_extractors, fea_dim), jnp.float32)

    mod = URTPropagationPallas(
        key_dim=fea_dim,
        query_dim=n_extractors * fea_dim,
        hid_dim=hid_dim,
        temp=1.0,
        att="cosine",
        seed=0,
    )

    score = jax.block_until_ready(mod(cat_proto))        # folded rows, 2 parallel tiles
    score1 = jax.block_until_ready(mod(cat_proto[0]))    # original single-task signature

    ref = _reference_forward(mod, cat_proto)
    assert score.shape == (batch, n_class, n_extractors)
    assert score1.shape == (n_class, n_extractors)
    # Exact reciprocal => rows sum to 1 to f32 precision.
    assert jnp.allclose(jnp.sum(score, axis=-1), 1.0, atol=1e-4)
    assert jnp.allclose(score, ref, atol=1e-3, rtol=1e-3)
    assert jnp.allclose(score1, ref[0], atol=1e-3, rtol=1e-3)

    print("KERNEL_OK")
</pallas_src>

<mosaic_0001>
module attributes {stable_mosaic.version = 11 : i64} {
  func.func @_urt_kernel(%arg0: i32, %arg1: memref<16x256xf32, #tpu.memory_space<vmem>>, %arg2: memref<256x512xf32, #tpu.memory_space<vmem>>, %arg3: memref<1x512xf32, #tpu.memory_space<vmem>>, %arg4: memref<256x128xf32, #tpu.memory_space<vmem>>, %arg5: memref<16x128xf32, #tpu.memory_space<vmem>>) attributes {dimension_semantics = [#tpu.dimension_semantics<parallel>], iteration_bounds = array<i64: 2>, scalar_prefetch = 0 : i64, scratch_operands = 0 : i64, tpu.core_type = #tpu.core_type<tc>, window_params = [{transform_indices = @transform_0, window_bounds = array<i64: 16, 256>}, {pipeline_mode = #tpu.pipeline_mode<synchronous>, transform_indices = @transform_1, window_bounds = array<i64: 256, 512>}, {pipeline_mode = #tpu.pipeline_mode<synchronous>, transform_indices = @transform_2, window_bounds = array<i64: 1, 512>}, {pipeline_mode = #tpu.pipeline_mode<synchronous>, transform_indices = @transform_3, window_bounds = array<i64: 256, 128>}, {transform_indices = @transform_4, window_bounds = array<i64: 16, 128>}]} {
    %c0 = arith.constant 0 : index
    %c0_0 = arith.constant 0 : index
    %0 = vector.load %arg1[%c0, %c0_0] : memref<16x256xf32, #tpu.memory_space<vmem>>, vector<16x256xf32>
    %c0_1 = arith.constant 0 : index
    %c0_2 = arith.constant 0 : index
    %1 = vector.load %arg2[%c0_1, %c0_2] : memref<256x512xf32, #tpu.memory_space<vmem>>, vector<256x512xf32>
    %cst = arith.constant dense<0.000000e+00> : vector<16x512xf32>
    %2 = tpu.matmul %0, %1, %cst {dimension_numbers = #tpu.dot_dimension_numbers<[1], [0], [0], [1], [0, 0, 1, 1], [], []>} : vector<16x256xf32>, vector<256x512xf32>, vector<16x512xf32> -> vector<16x512xf32>
    %c0_3 = arith.constant 0 : index
    %c0_4 = arith.constant 0 : index
    %3 = vector.load %arg3[%c0_3, %c0_4] : memref<1x512xf32, #tpu.memory_space<vmem>>, vector<1x512xf32>
    %4 = vector.broadcast %3 : vector<1x512xf32> to vector<16x512xf32>
    %5 = arith.addf %2, %4 : vector<16x512xf32>
    %6 = vector.extract_strided_slice %5 {offsets = [0, 0], sizes = [16, 256], strides = [1, 1]} : vector<16x512xf32> to vector<16x256xf32>
    %7 = vector.extract_strided_slice %5 {offsets = [0, 256], sizes = [16, 256], strides = [1, 1]} : vector<16x512xf32> to vector<16x256xf32>
    %c0_5 = arith.constant 0 : index
    %c0_6 = arith.constant 0 : index
    %8 = vector.load %arg4[%c0_5, %c0_6] : memref<256x128xf32, #tpu.memory_space<vmem>>, vector<256x128xf32>
    %9 = tpu.iota {dimensions = array<i32: 1>} : vector<16x128xi32>
    %10 = arith.mulf %7, %6 : vector<16x256xf32>
    %11 = arith.mulf %6, %6 : vector<16x256xf32>
    %12 = arith.mulf %7, %7 : vector<16x256xf32>
    %13 = tpu.concatenate %10, %11, %12 in 0 : vector<16x256xf32>, vector<16x256xf32>, vector<16x256xf32> -> vector<48x256xf32>
    %cst_7 = arith.constant dense<0.000000e+00> : vector<48x128xf32>
    %14 = tpu.matmul %13, %8, %cst_7 {dimension_numbers = #tpu.dot_dimension_numbers<[1], [0], [0], [1], [0, 0, 1, 1], [], []>} : vector<48x256xf32>, vector<256x128xf32>, vector<48x128xf32> -> vector<48x128xf32>
    %15 = vector.extract_strided_slice %14 {offsets = [0, 0], sizes = [16, 128], strides = [1, 1]} : vector<48x128xf32> to vector<16x128xf32>
    %16 = vector.extract_strided_slice %14 {offsets = [16, 0], sizes = [16, 128], strides = [1, 1]} : vector<48x128xf32> to vector<16x128xf32>
    %17 = vector.extract_strided_slice %14 {offsets = [32, 0], sizes = [16, 128], strides = [1, 1]} : vector<48x128xf32> to vector<16x128xf32>
    %cst_8 = arith.constant 1.000000e-16 : f32
    %18 = vector.broadcast %cst_8 : f32 to vector<16x128xf32>
    %19 = arith.maximumf %17, %18 : vector<16x128xf32>
    %20 = math.rsqrt %19 : vector<16x128xf32>
    %21 = arith.mulf %15, %20 : vector<16x128xf32>
    %cst_9 = arith.constant 1.000000e-16 : f32
    %22 = vector.broadcast %cst_9 : f32 to vector<16x128xf32>
    %23 = arith.maximumf %16, %22 : vector<16x128xf32>
    %24 = math.rsqrt %23 : vector<16x128xf32>
    %25 = arith.mulf %21, %24 : vector<16x128xf32>
    %c8_i32 = arith.constant 8 : i32
    %26 = vector.broadcast %c8_i32 : i32 to vector<16x128xi32>
    %27 = arith.cmpi slt, %9, %26 : vector<16x128xi32>
    %cst_10 = arith.constant 1.000000e+00 : f32
    %28 = vector.broadcast %cst_10 : f32 to vector<16x128xf32>
    %29 = arith.mulf %28, %25 : vector<16x128xf32>
    %30 = math.exp %29 : vector<16x128xf32>
    %cst_11 = arith.constant 0.000000e+00 : f32
    %31 = vector.broadcast %cst_11 : f32 to vector<16x128xf32>
    %32 = arith.select %27, %30, %31 : vector<16x128xi1>, vector<16x128xf32>
    %cst_12 = arith.constant dense<0.000000e+00> : vector<16xf32>
    %33 = vector.multi_reduction <add>, %32, %cst_12 [1] : vector<16x128xf32> to vector<16xf32>
    %34 = vector.shape_cast %33 : vector<16xf32> to vector<16x1xf32>
    %35 = tpu.reciprocal %34 : vector<16x1xf32> -> vector<16x1xf32>
    %36 = vector.broadcast %35 : vector<16x1xf32> to vector<16x128xf32>
    %37 = arith.mulf %32, %36 : vector<16x128xf32>
    %c0_13 = arith.constant 0 : index
    %c0_14 = arith.constant 0 : index
    %38 = vector.load %arg5[%c0_13, %c0_14] : memref<16x128xf32, #tpu.memory_space<vmem>>, vector<16x128xf32>
    tpu.vector_store %arg5[%c0_13, %c0_14], %37 {strides = array<i32>} : memref<16x128xf32, #tpu.memory_space<vmem>>, vector<16x128xf32>,
    return
  }
  func.func @transform_0(%arg0: i32) -> (i32, i32) {
    %c0_i32 = arith.constant 0 : i32
    %c0_i32_0 = arith.constant 0 : i32
    return %arg0, %c0_i32 : i32, i32
  }
  func.func @transform_1(%arg0: i32) -> (i32, i32) {
    %c0_i32 = arith.constant 0 : i32
    %c0_i32_0 = arith.constant 0 : i32
    %c0_i32_1 = arith.constant 0 : i32
    return %c0_i32, %c0_i32_0 : i32, i32
  }
  func.func @transform_2(%arg0: i32) -> (i32, i32) {
    %c0_i32 = arith.constant 0 : i32
    %c0_i32_0 = arith.constant 0 : i32
    %c0_i32_1 = arith.constant 0 : i32
    return %c0_i32, %c0_i32_0 : i32, i32
  }
  func.func @transform_3(%arg0: i32) -> (i32, i32) {
    %c0_i32 = arith.constant 0 : i32
    %c0_i32_0 = arith.constant 0 : i32
    %c0_i32_1 = arith.constant 0 : i32
    return %c0_i32, %c0_i32_0 : i32, i32
  }
  func.func @transform_4(%arg0: i32) -> (i32, i32) {
    %c0_i32 = arith.constant 0 : i32
    %c0_i32_0 = arith.constant 0 : i32
    return %arg0, %c0_i32 : i32, i32
  }
}

</mosaic_0001>

<bundles_post_ra>
// kernel: tpu_custom_call.1
= control target key start
LH: loop header
LB: loop body
LE: loop exit
PB: predicated region body
PF: predicated region fallthrough
CT: control target
= control target key end

     0   :  { %9 = vsyncpa [#allocation3], 0  ;;  %s1474_s0 = inlined_call_operand.hbm [shape: f32[32,256], index: 0, kind: input, shape index: {}]   ;;  %s1475_s1 = inlined_call_operand.hbm [shape: f32[256,512], index: 1, kind: input, shape index: {}]   ;;  %s1476_s2 = inlined_call_operand.hbm [shape: f32[1,512], index: 2, kind: input, shape index: {}]   ;;  %s1477_s3 = inlined_call_operand.hbm [shape: f32[256,128], index: 3, kind: input, shape index: {}]   ;;  %s1478_s4 = inlined_call_operand.hbm [shape: f32[32,128], index: 4, kind: output, shape index: {}]  }
   0x1   :  { %11 = vsyncpa [#allocation3 + $0x1], 0 }
   0x2   :  { %12 = vsyncpa [#allocation6], 0 }
   0x3   :  { %13 = vsyncpa [#allocation9], 0 }
   0x4   :  { %14 = vsyncpa [#allocation4], 0 }
   0x5   :  { %16 = vsyncpa [#allocation4 + $0x1], 0  ;;  %s1277_s15 = smov 0   ;;  %s1279_s16 = smov 0  }
   0x6   :  { %s1281_s17 = smov 0   ;;  %s1283_s18 = smov 0  }
   0x7 LB: > { %s1298_s19 = sadd.s32 4294967295, %s1239_s18   ;;  %s920_s20 = sadd.s32 4294967294, %s1239_s18   ;;  %s1239_s18 = sphi %s1283_s18, %s1489_s18   ;;  %s1235_s17 = sphi %s1281_s17, %s1488_s17   ;;  %s1231_s16 = sphi %s1279_s16, %s1487_s16   ;;  %s1227_s15 = sphi %s1277_s15, %s1486_s15  }
   0x8   : > { %p42_p0 = scmp.ne.s32.totalorder %s1231_s16, %s1227_s15  ;;  %p43_p1 = scmp.eq.s32.totalorder %s1298_s19, 0 }
   0x9   : > { %p129_p2 = scmp.eq.s32.totalorder %s1298_s19, 1  ;;  %p135_p3 = scmp.eq.s32.totalorder %s920_s20, 1 }
   0xa   : > { %p1307_p4 = por %p43_p1, %p42_p0  ;;  %p921_p5 = scmp.ge.s32.totalorder %s1239_s18, 1 }
   0xb   : > { %p1312_p6 = por %p135_p3, %p42_p0  ;;  %p142_p7 = scmp.lt.s32.totalorder %s1239_s18, 3 }
   0xc   : > { %s153_s25 = sshll.u32 %s1475_s1, 4  ;;  %s1241_s27 = smov [#allocation5]   ;;  %s154_s25 = int_to_ptr.hbm [resolvable:$true] %s153_s25 }
   0xd   : > { %p1320_p8 = pnand %p921_p5, %p142_p7  ;;  %s155_s28 = sshll.u32 %s1241_s27, 4  ;;  %s156_s28 = int_to_ptr.vmem [resolvable:$true] %s155_s28 }
   0xe   : > { %s168_s6 = sshll.u32 %s1476_s2, 4  ;;  %s1242_s7 = smov 512   ;;  %s169_s6 = int_to_ptr.hbm [resolvable:$true] %s168_s6 }
   0xf   : > { %p960_p9 = pneg %p1320_p8  ;;  %s1243_s8 = smov 32  }
  0x10   : > { %s1244_s9 = smov [#allocation7]   ;;  %s179_s13 = sshll.u32 %s1477_s3, 4  ;;  %s180_s13 = int_to_ptr.hbm [resolvable:$true] %s179_s13 }
  0x11   : > { %p1328_p10 = pnand %p960_p9, %p43_p1  ;;  %s170_s10 = sshll.u32 %s1244_s9, 4  ;;  %s171_s10 = int_to_ptr.vmem [resolvable:$true] %s170_s10 }
  0x12   : > { %s1245_s14 = smov [#allocation8]   ;;  %s1246_s23 = smov 128  }
  0x13   : > { %963 = dma.hbm_to_vmem [thread:$0]  (!%p1328_p10), %s154_s25, 16384, %s156_s28, [#allocation6], %s1242_s7, %s1242_s7, %s1243_s8  }
  0x14   : > { %966 = dma.hbm_to_vmem [thread:$0]  (!%p1328_p10), %s169_s6, 64, %s171_s10, [#allocation6]  }
  0x15   : > { %s181_s20 = sshll.u32 %s1245_s14, 4  ;;  %s1247_s24 = smov 8   ;;  %s182_s20 = int_to_ptr.vmem [resolvable:$true] %s181_s20 }
  0x16   : > { %969 = dma.hbm_to_vmem [thread:$0]  (!%p1328_p10), %s180_s13, 4096, %s182_s20, [#allocation9], %s1246_s23, %s1246_s23, %s1247_s24  }
  0x17   : > { %s1346_s25 = sadd.s32 1, %s1239_s18   ;;  %s29_s28 = sadd.s32 1, %s1235_s17 }
  0x18   : > { %s26_s27 = ssub.s32 %s1239_s18, %s1346_s25  ;;  %p36_p13 = scmp.ne.s32.totalorder %s1235_s17, %s1231_s16 }
  0x19   : > { %p27_p12 = scmp.eq.s32.totalorder %s26_s27, 0  ;;  %p37_p0 = scmp.eq.s32.totalorder %s1239_s18, 0 }
  0x1a   : > { %p981_p3 = scmp.lt.s32.totalorder %s1239_s18, 2  ;;  %p1360_p7 = por %p129_p2, %p36_p13 }
  0x1b   : > { %s1356_s30 = scalar_select %p27_p12, %s1235_s17, %s29_s28  }
  0x1c   : > { %p38_p5 = por %p37_p0, %p36_p13  ;;  %s195_s29 = sand.u32 1, %s1235_s17  }
  0x1d   : > { %s942_s6 = sshll.u32 %s1239_s18, 5  ;;  %s926_s7 = sshll.u32 %s195_s29, 5 }
  0x1e   : > { %s205_s10 = scalar_lea.hbm %s1474_s0, %s942_s6  ;;  %s199_s12 = scalar_lea.vmem [#allocation2], %s926_s7 }
  0x1f   : > { %s206_s11 = sshll.u32 %s205_s10, 4  ;;  %s208_s13 = sshll.u32 %s199_s12, 4  ;;  %s207_s11 = int_to_ptr.hbm [resolvable:$true] %s206_s11  ;;  %s209_s13 = int_to_ptr.vmem [resolvable:$true] %s208_s13 }
  0x20   : > { %p1371_p9 = pnand %p981_p3, %p38_p5  ;;  %s196_s20 = scalar_lea.sflag [#allocation3], %s195_s29 }
  0x21   : > { %s1135_s23 = sshra.s32 %s207_s11, 4  ;;  %s1142_s6 = scalar_lea.hbm %s1474_s0, 64  ;;  %s1136_s23 = int_to_ptr.hbm [resolvable:$true] %s1135_s23 }
  0x22   : > { %s1137_s24 = scalar_lea.hbm %s1136_s23, 32  ;;  %p1139_p10 = pneg %p1371_p9 }
  0x23   : > { %p1138_p2 = scmp.ne.s32.totalorder %s1136_s23, %s1137_s24  ;;  %p1143_p0 = scmp.lt.s32.totalorder %s1136_s23, %s1474_s0 }
  0x24   : > { %p1144_p3 = scmp.lt.s32.totalorder %s1142_s6, %s1137_s24 }
  0x25   : > { %p1140_p12 = pnand %p1139_p10, %p1138_p2 }
  0x26   : > { %p1145_p5 = por %p1144_p3, %p1143_p0 }
  0x27   : > { %p1141_p13 = pneg %p1140_p12 }
  0x29   : > { %p1146_p11 = pnand %p1145_p5, %p1141_p13 }
  0x2b   : > { %1149 = shalt.err (!%p1146_p11)
}
  0x2c   : > { %s1248_s29 = smov 256   ;;  %s1249_s9 = smov 16  }
  0x2d   : > { %973 = dma.hbm_to_vmem [thread:$0]  (!%p1371_p9), %s207_s11, 512, %s209_s13, %s196_s20, %s1248_s29, %s1248_s29, %s1249_s9  }
  0x2e   : > { %220 = sbr.rel (%p1320_p8) target bundleno = 631 (0x277), region = 36  ;;  %s1388_s10 = sand.u32 (!%p1320_p8), 1, %s1231_s16  }
  0x2f   : > { %s931_s12 = sshll.u32 (!%p1320_p8), %s1388_s10, 5  ;;  %s223_s23 = scalar_lea.sflag (!%p1320_p8), [#allocation3], %s1388_s10 }
  0x30   : > { %s1392_s24 = scalar_lea.vmem (!%p1320_p8), [#allocation2], %s931_s12 }
  0x33   : > { %1210 = dma.done.wait (%p1307_p4), %s223_s23, 512  }
  0x34   : > { %1212 = vsyncadd (%p1307_p4), %s223_s23, 4294966784 }
  0x35   : > { %1214 = dma.done.wait (%p43_p1), [#allocation6], 16448  }
  0x36   : > { %1216 = vsyncadd (%p43_p1), [#allocation6], 4294950848 }
  0x37   : > { %1218 = dma.done.wait (%p43_p1), [#allocation9], 4096  }
  0x38   : > { %1220 = vsyncadd (%p43_p1), [#allocation9], 4294963200  ;;  %v333_v0 = vld [vmem:[#allocation5 + $0x1e0] sm:$0xff]  ;;  %v335_v11 = vld [vmem:[#allocation5 + $0x1f0] sm:$0xff]  ;;  %s935_s21 = sshll.u32 %s1388_s10, 4  ;;  %s943_s26 = sshll.u32 %s1298_s19, 4 }
  0x39   : > { %v329_v1 = vld [vmem:[#allocation5 + $0x1c0] sm:$0xff]  ;;  %411 = vmatpush.msra.mxu2 %v333_v0  ;;  %503 = vmatpush.msra.mxu0 %v335_v11  ;;  %v331_v13 = vld [vmem:[#allocation5 + $0x1d0] sm:$0xff]  ;;  %v334_v55 = vld [vmem:[#allocation5 + $0x1e8] sm:$0xff]  ;;  %s814_s14 = scalar_lea.hbm %s1478_s4, %s943_s26  ;;  %s266_s20 = scalar_lea.vmem [#allocation10], %s935_s21 }
  0x3a   : > { %v397_v2 = vld [vmem:[#allocation5 + $0x3e0] sm:$0xff]  ;;  %v399_v14 = vld [vmem:[#allocation5 + $0x3f0] sm:$0xff]  ;;  %v398_v56 = vld [vmem:[#allocation5 + $0x3e8] sm:$0xff]  ;;  %s815_s27 = sshll.u32 %s266_s20, 4  ;;  %s817_s28 = sshll.u32 %s814_s14, 4  ;;  %s816_s27 = int_to_ptr.vmem [resolvable:$true] %s815_s27  ;;  %s818_s28 = int_to_ptr.hbm [resolvable:$true] %s817_s28 }
  0x3b   : > { %434 = vmatpush.msra.mxu3 %v397_v2  ;;  %v393_v3 = vld [vmem:[#allocation5 + $0x3c0] sm:$0xff]  ;;  %412 = vmatpush.msra.mxu2 %v329_v1  ;;  %v327_v15 = vld [vmem:[#allocation5 + $0x1b0] sm:$0xff]  ;;  %v330_v59 = vld [vmem:[#allocation5 + $0x1c8] sm:$0xff]  ;;  %s803_s19 = scalar_lea.sflag [#allocation4], %s1388_s10  ;;  %s1179_s6 = sshra.s32 %s818_s28, 4  ;;  %s1180_s6 = int_to_ptr.hbm [resolvable:$true] %s1179_s6 }
  0x3c   : > { %v325_v4 = vld [vmem:[#allocation5 + $0x1a0] sm:$0xff]  ;;  %v395_v16 = vld [vmem:[#allocation5 + $0x3d0] sm:$0xff]  ;;  %504 = vmatpush.msra.mxu0 %v331_v13  ;;  %526 = vmatpush.msra.mxu1 %v399_v14  ;;  %v394_v60 = vld [vmem:[#allocation5 + $0x3c8] sm:$0xff]  ;;  %s1181_s7 = scalar_lea.hbm %s1180_s6, 16  ;;  %s1185_s9 = scalar_lea.hbm %s1478_s4, 32 }
  0x3d   : > { %v389_v5 = vld [vmem:[#allocation5 + $0x3a0] sm:$0xff]  ;;  %435 = vmatpush.msra.mxu3 %v393_v3  ;;  %413 = vmatpush.msra.mxu2 %v325_v4  ;;  %v323_v19 = vld [vmem:[#allocation5 + $0x190] sm:$0xff]  ;;  %v326_v63 = vld [vmem:[#allocation5 + $0x1a8] sm:$0xff]  ;;  %p1182_p1 = scmp.ne.s32.totalorder %s1180_s6, %s1181_s7  ;;  %p1186_p11 = scmp.lt.s32.totalorder %s1180_s6, %s1478_s4 }
  0x3e   : > { %v321_v6 = vld [vmem:[#allocation5 + $0x180] sm:$0xff]  ;;  %v391_v20 = vld [vmem:[#allocation5 + $0x3b0] sm:$0xff]  ;;  %505 = vmatpush.msra.mxu0 %v327_v15  ;;  %527 = vmatpush.msra.mxu1 %v395_v16  ;;  %v390_v0 = vld [vmem:[#allocation5 + $0x3a8] sm:$0xff]  ;;  %p1187_p9 = scmp.lt.s32.totalorder %s1185_s9, %s1181_s7 }
  0x3f   : > { %v385_v7 = vld [vmem:[#allocation5 + $0x380] sm:$0xff]  ;;  %436 = vmatpush.msra.mxu3 %v389_v5  ;;  %414 = vmatpush.msra.mxu2 %v321_v6  ;;  %v319_v23 = vld [vmem:[#allocation5 + $0x170] sm:$0xff]  ;;  %v1410_v2 = vld [vmem:[%s1392_s24 + $0x8] sm:$0xff]  ;;  %p1183_p4 = pnand %p1182_p1, %p1360_p7 }
  0x40   : > { %v317_v8 = vld [vmem:[#allocation5 + $0x160] sm:$0xff]  ;;  %v387_v24 = vld [vmem:[#allocation5 + $0x390] sm:$0xff]  ;;  %506 = vmatpush.msra.mxu0 %v323_v19  ;;  %528 = vmatpush.msra.mxu1 %v391_v20  ;;  %v322_v3 = vld [vmem:[#allocation5 + $0x188] sm:$0xff]  ;;  %p1188_p2 = por %p1187_p9, %p1186_p11 }
  0x41   : > { %v381_v9 = vld [vmem:[#allocation5 + $0x360] sm:$0xff]  ;;  %437 = vmatpush.msra.mxu3 %v385_v7  ;;  %415 = vmatpush.msra.mxu2 %v317_v8  ;;  %v315_v27 = vld [vmem:[#allocation5 + $0x150] sm:$0xff]  ;;  %v386_v4 = vld [vmem:[#allocation5 + $0x388] sm:$0xff]  ;;  %p1184_p8 = pneg %p1183_p4 }
  0x42   : > { %v313_v10 = vld [vmem:[#allocation5 + $0x140] sm:$0xff]  ;;  %v383_v28 = vld [vmem:[#allocation5 + $0x370] sm:$0xff]  ;;  %507 = vmatpush.msra.mxu0 %v319_v23  ;;  %529 = vmatpush.msra.mxu1 %v387_v24  ;;  %v318_v7 = vld [vmem:[#allocation5 + $0x168] sm:$0xff] }
  0x43   : > { %v377_v12 = vld [vmem:[#allocation5 + $0x340] sm:$0xff]  ;;  %438 = vmatpush.msra.mxu3 %v381_v9  ;;  %416 = vmatpush.msra.mxu2 %v313_v10  ;;  %v311_v31 = vld [vmem:[#allocation5 + $0x130] sm:$0xff]  ;;  %v382_v8 = vld [vmem:[#allocation5 + $0x368] sm:$0xff]  ;;  %p1189_p10 = pnand %p1188_p2, %p1184_p8 }
  0x44   : > { %v309_v17 = vld [vmem:[#allocation5 + $0x120] sm:$0xff]  ;;  %v379_v32 = vld [vmem:[#allocation5 + $0x350] sm:$0xff]  ;;  %508 = vmatpush.msra.mxu0 %v315_v27  ;;  %530 = vmatpush.msra.mxu1 %v383_v28  ;;  %v314_v11 = vld [vmem:[#allocation5 + $0x148] sm:$0xff] }
  0x45   : > { %v373_v18 = vld [vmem:[#allocation5 + $0x320] sm:$0xff]  ;;  %439 = vmatpush.msra.mxu3 %v377_v12  ;;  %417 = vmatpush.msra.mxu2 %v309_v17  ;;  %v307_v35 = vld [vmem:[#allocation5 + $0x110] sm:$0xff]  ;;  %v378_v12 = vld [vmem:[#allocation5 + $0x348] sm:$0xff] }
  0x46   : > { %v305_v21 = vld [vmem:[#allocation5 + $0x100] sm:$0xff]  ;;  %v375_v36 = vld [vmem:[#allocation5 + $0x330] sm:$0xff]  ;;  %509 = vmatpush.msra.mxu0 %v311_v31  ;;  %531 = vmatpush.msra.mxu1 %v379_v32  ;;  %v310_v14 = vld [vmem:[#allocation5 + $0x128] sm:$0xff] }
  0x47   : > { %v369_v22 = vld [vmem:[#allocation5 + $0x300] sm:$0xff]  ;;  %440 = vmatpush.msra.mxu3 %v373_v18  ;;  %418 = vmatpush.msra.mxu2 %v305_v21  ;;  %v303_v39 = vld [vmem:[#allocation5 + $0xf0] sm:$0xff]  ;;  %v374_v15 = vld [vmem:[#allocation5 + $0x328] sm:$0xff] }
  0x48   : > { %v301_v25 = vld [vmem:[#allocation5 + $0xe0] sm:$0xff]  ;;  %v371_v40 = vld [vmem:[#allocation5 + $0x310] sm:$0xff]  ;;  %510 = vmatpush.msra.mxu0 %v307_v35  ;;  %532 = vmatpush.msra.mxu1 %v375_v36  ;;  %v306_v17 = vld [vmem:[#allocation5 + $0x108] sm:$0xff] }
  0x49   : > { %v365_v26 = vld [vmem:[#allocation5 + $0x2e0] sm:$0xff]  ;;  %441 = vmatpush.msra.mxu3 %v369_v22  ;;  %419 = vmatpush.msra.mxu2 %v301_v25  ;;  %v299_v43 = vld [vmem:[#allocation5 + $0xd0] sm:$0xff]  ;;  %v370_v18 = vld [vmem:[#allocation5 + $0x308] sm:$0xff] }
  0x4a   : > { %v297_v29 = vld [vmem:[#allocation5 + $0xc0] sm:$0xff]  ;;  %v367_v44 = vld [vmem:[#allocation5 + $0x2f0] sm:$0xff]  ;;  %511 = vmatpush.msra.mxu0 %v303_v39  ;;  %533 = vmatpush.msra.mxu1 %v371_v40  ;;  %v1419_v19 = vld [vmem:[%s1392_s24 + $0x18] sm:$0xff] }
  0x4b   : > { %v361_v30 = vld [vmem:[#allocation5 + $0x2c0] sm:$0xff]  ;;  %442 = vmatpush.msra.mxu3 %v365_v26  ;;  %420 = vmatpush.msra.mxu2 %v297_v29  ;;  %v295_v47 = vld [vmem:[#allocation5 + $0xb0] sm:$0xff]  ;;  %v302_v20 = vld [vmem:[#allocation5 + $0xe8] sm:$0xff] }
  0x4c   : > { %v293_v33 = vld [vmem:[#allocation5 + $0xa0] sm:$0xff]  ;;  %v363_v48 = vld [vmem:[#allocation5 + $0x2d0] sm:$0xff]  ;;  %512 = vmatpush.msra.mxu0 %v299_v43  ;;  %534 = vmatpush.msra.mxu1 %v367_v44  ;;  %v366_v21 = vld [vmem:[#allocation5 + $0x2e8] sm:$0xff] }
  0x4d   : > { %v357_v34 = vld [vmem:[#allocation5 + $0x2a0] sm:$0xff]  ;;  %443 = vmatpush.msra.mxu3 %v361_v30  ;;  %421 = vmatpush.msra.mxu2 %v293_v33  ;;  %v291_v51 = vld [vmem:[#allocation5 + $0x90] sm:$0xff]  ;;  %v298_v22 = vld [vmem:[#allocation5 + $0xc8] sm:$0xff] }
  0x4e   : > { %v289_v37 = vld [vmem:[#allocation5 + $0x80] sm:$0xff]  ;;  %v359_v52 = vld [vmem:[#allocation5 + $0x2b0] sm:$0xff]  ;;  %513 = vmatpush.msra.mxu0 %v295_v47  ;;  %535 = vmatpush.msra.mxu1 %v363_v48  ;;  %v362_v23 = vld [vmem:[#allocation5 + $0x2c8] sm:$0xff] }
  0x4f   : > { %v353_v38 = vld [vmem:[#allocation5 + $0x280] sm:$0xff]  ;;  %444 = vmatpush.msra.mxu3 %v357_v34  ;;  %422 = vmatpush.msra.mxu2 %v289_v37  ;;  %v287_v57 = vld [vmem:[#allocation5 + $0x70] sm:$0xff]  ;;  %v294_v24 = vld [vmem:[#allocation5 + $0xa8] sm:$0xff] }
  0x50   : > { %v285_v41 = vld [vmem:[#allocation5 + $0x60] sm:$0xff]  ;;  %514 = vmatpush.msra.mxu0 %v291_v51  ;;  %536 = vmatpush.msra.mxu1 %v359_v52  ;;  %v355_v58 = vld [vmem:[#allocation5 + $0x290] sm:$0xff]  ;;  %v358_v25 = vld [vmem:[#allocation5 + $0x2a8] sm:$0xff] }
  0x51   : > { %v349_v42 = vld [vmem:[#allocation5 + $0x260] sm:$0xff]  ;;  %445 = vmatpush.msra.mxu3 %v353_v38  ;;  %423 = vmatpush.msra.mxu2 %v285_v41  ;;  %v283_v62 = vld [vmem:[#allocation5 + $0x50] sm:$0xff]  ;;  %v290_v26 = vld [vmem:[#allocation5 + $0x88] sm:$0xff] }
  0x52   : > { %v281_v45 = vld [vmem:[#allocation5 + $0x40] sm:$0xff]  ;;  %515 = vmatpush.msra.mxu0 %v287_v57  ;;  %537 = vmatpush.msra.mxu1 %v355_v58  ;;  %v351_v1 = vld [vmem:[#allocation5 + $0x270] sm:$0xff]  ;;  %v354_v27 = vld [vmem:[#allocation5 + $0x288] sm:$0xff] }
  0x53   : > { %v345_v46 = vld [vmem:[#allocation5 + $0x240] sm:$0xff]  ;;  %446 = vmatpush.msra.mxu3 %v349_v42  ;;  %424 = vmatpush.msra.mxu2 %v281_v45  ;;  %v279_v5 = vld [vmem:[#allocation5 + $0x30] sm:$0xff]  ;;  %v286_v28 = vld [vmem:[#allocation5 + $0x68] sm:$0xff] }
  0x54   : > { %v277_v49 = vld [vmem:[#allocation5 + $0x20] sm:$0xff]  ;;  %516 = vmatpush.msra.mxu0 %v283_v62  ;;  %v347_v6 = vld [vmem:[#allocation5 + $0x250] sm:$0xff]  ;;  %538 = vmatpush.msra.mxu1 %v351_v1  ;;  %v350_v29 = vld [vmem:[#allocation5 + $0x268] sm:$0xff] }
  0x55   : > { %v341_v50 = vld [vmem:[#allocation5 + $0x220] sm:$0xff]  ;;  %447 = vmatpush.msra.mxu3 %v345_v46  ;;  %425 = vmatpush.msra.mxu2 %v277_v49  ;;  %v275_v9 = vld [vmem:[#allocation5 + $0x10] sm:$0xff]  ;;  %v282_v30 = vld [vmem:[#allocation5 + $0x48] sm:$0xff] }
  0x56   : > { %v273_v53 = vld [vmem:[#allocation5] sm:$0xff]  ;;  %v343_v10 = vld [vmem:[#allocation5 + $0x230] sm:$0xff]  ;;  %517 = vmatpush.msra.mxu0 %v279_v5  ;;  %539 = vmatpush.msra.mxu1 %v347_v6  ;;  %v346_v31 = vld [vmem:[#allocation5 + $0x248] sm:$0xff] }
  0x57   : > { %v337_v54 = vld [vmem:[#allocation5 + $0x200] sm:$0xff]  ;;  %448 = vmatpush.msra.mxu3 %v341_v50  ;;  %426 = vmatpush.msra.mxu2 %v273_v53  ;;  %v339_v13 = vld [vmem:[#allocation5 + $0x210] sm:$0xff]  ;;  %v278_v32 = vld [vmem:[#allocation5 + $0x28] sm:$0xff] }
  0x58   : > { %v1407_v61 = vld [vmem:[%s1392_s24] sm:$0xff]  ;;  %518 = vmatpush.msra.mxu0 %v275_v9  ;;  %540 = vmatpush.msra.mxu1 %v343_v10  ;;  %v1415_v16 = vld [vmem:[%s1392_s24 + $0x10] sm:$0xff]  ;;  %v342_v33 = vld [vmem:[#allocation5 + $0x228] sm:$0xff] }
  0x59   : > { %449 = vmatpush.msra.mxu3 %v337_v54  ;;  %457 = vmatpush.msrb.mxu2 %v334_v55  ;;  %v274_v34 = vld [vmem:[#allocation5 + $0x8] sm:$0xff]  ;;  %v336_v36 = vld [vmem:[#allocation5 + $0x1f8] sm:$0xff] }
  0x5a   : > { %427 = vmatmul.f32.vlgmr.msra.gmra.mxu2 %v1407_v61  ;;  %450 = vmatmul.f32.vlgmr.msra.gmra.mxu3 %v1410_v2  ;;  %v338_v35 = vld [vmem:[#allocation5 + $0x208] sm:$0xff]  ;;  %v400_v37 = vld [vmem:[#allocation5 + $0x3f8] sm:$0xff] }
  0x5b   : > { %480 = vmatpush.msrb.mxu3 %v398_v56  ;;  %458 = vmatpush.msrb.mxu2 %v330_v59  ;;  %v332_v38 = vld [vmem:[#allocation5 + $0x1d8] sm:$0xff]  ;;  %v608_v54 = vld [vmem:[#allocation8 + $0x68] sm:$0xff]  ;;  %v607_v57 = vld [vmem:[#allocation8 + $0x60] sm:$0xff] }
  0x5c   : > { %519 = vmatmul.f32.vlgmr.msra.gmra.mxu0 %v1407_v61  ;;  %541 = vmatpush.msra.mxu1 %v339_v13  ;;  %v396_v39 = vld [vmem:[#allocation5 + $0x3d8] sm:$0xff] }
  0x5d   : > { %481 = vmatpush.msrb.mxu3 %v394_v60  ;;  %459 = vmatpush.msrb.mxu2 %v326_v63  ;;  %v328_v40 = vld [vmem:[#allocation5 + $0x1b8] sm:$0xff] }
  0x5e   : > { %542 = vmatmul.f32.vlgmr.msra.gmra.mxu1 %v1410_v2  ;;  %v392_v41 = vld [vmem:[#allocation5 + $0x3b8] sm:$0xff] }
  0x5f   : > { %482 = vmatpush.msrb.mxu3 %v390_v0  ;;  %460 = vmatpush.msrb.mxu2 %v322_v3  ;;  %v324_v42 = vld [vmem:[#allocation5 + $0x198] sm:$0xff] }
  0x60   : > { %v388_v43 = vld [vmem:[#allocation5 + $0x398] sm:$0xff] }
  0x61   : > { %483 = vmatpush.msrb.mxu3 %v386_v4  ;;  %461 = vmatpush.msrb.mxu2 %v318_v7  ;;  %v320_v44 = vld [vmem:[#allocation5 + $0x178] sm:$0xff]  ;;  %v604_v4 = vld [vmem:[#allocation8 + $0x48] sm:$0xff]  ;;  %v603_v7 = vld [vmem:[#allocation8 + $0x40] sm:$0xff] }
  0x62   : > { %430 = vmatmul.f32.gmra.mxu2 %v1415_v16  ;;  %453 = vmatmul.f32.gmra.mxu3 %v1419_v19  ;;  %v384_v45 = vld [vmem:[#allocation5 + $0x378] sm:$0xff] }
  0x63   : > { %484 = vmatpush.msrb.mxu3 %v382_v8  ;;  %462 = vmatpush.msrb.mxu2 %v314_v11  ;;  %v316_v46 = vld [vmem:[#allocation5 + $0x158] sm:$0xff] }
  0x64   : > { %522 = vmatmul.f32.gmra.mxu0 %v1415_v16  ;;  %v380_v47 = vld [vmem:[#allocation5 + $0x358] sm:$0xff] }
  0x65   : > { %485 = vmatpush.msrb.mxu3 %v378_v12  ;;  %463 = vmatpush.msrb.mxu2 %v310_v14  ;;  %v610_v48 = vld [vmem:[#allocation8 + $0x78] sm:$0xff]  ;;  %v609_v51 = vld [vmem:[#allocation8 + $0x70] sm:$0xff] }
  0x66   : > { %545 = vmatmul.f32.gmra.mxu1 %v1419_v19  ;;  %v312_v49 = vld [vmem:[#allocation5 + $0x138] sm:$0xff]  ;;  %641 = vmatpush.msrb.mxu0 %v610_v48 }
  0x67   : > { %486 = vmatpush.msrb.mxu3 %v374_v15  ;;  %464 = vmatpush.msrb.mxu2 %v306_v17  ;;  %v376_v50 = vld [vmem:[#allocation5 + $0x338] sm:$0xff]  ;;  %v600_v17 = vld [vmem:[#allocation8 + $0x28] sm:$0xff] }
  0x68   : > { %v308_v52 = vld [vmem:[#allocation5 + $0x118] sm:$0xff]  ;;  %642 = vmatpush.msrb.mxu0 %v609_v51  ;;  %v615_v51 = vld [vmem:[#allocation8 + $0xa0] sm:$0xff] }
  0x69   : > { %487 = vmatpush.msrb.mxu3 %v370_v18  ;;  %465 = vmatpush.msrb.mxu2 %v302_v20  ;;  %v372_v53 = vld [vmem:[#allocation5 + $0x318] sm:$0xff]  ;;  %v599_v18 = vld [vmem:[#allocation8 + $0x20] sm:$0xff] }
  0x6a   : > { %v304_v55 = vld [vmem:[#allocation5 + $0xf8] sm:$0xff]  ;;  %643 = vmatpush.msrb.mxu0 %v608_v54 }
  0x6b   : > { %488 = vmatpush.msrb.mxu3 %v366_v21  ;;  %466 = vmatpush.msrb.mxu2 %v298_v22  ;;  %v368_v56 = vld [vmem:[#allocation5 + $0x2f8] sm:$0xff]  ;;  %v596_v22 = vld [vmem:[#allocation8 + $0x8] sm:$0xff] }
  0x6c   : > { %v300_v58 = vld [vmem:[#allocation5 + $0xd8] sm:$0xff]  ;;  %644 = vmatpush.msrb.mxu0 %v607_v57  ;;  %v612_v57 = vld [vmem:[#allocation8 + $0x88] sm:$0xff] }
  0x6d   : > { %489 = vmatpush.msrb.mxu3 %v362_v23  ;;  %467 = vmatpush.msrb.mxu2 %v294_v24  ;;  %v364_v59 = vld [vmem:[#allocation5 + $0x2d8] sm:$0xff]  ;;  %v595_v23 = vld [vmem:[#allocation8] sm:$0xff] }
  0x6e   : > { %v606_v60 = vld [vmem:[#allocation8 + $0x58] sm:$0xff]  ;;  %v605_v0 = vld [vmem:[#allocation8 + $0x50] sm:$0xff] }
  0x6f   : > { %490 = vmatpush.msrb.mxu3 %v358_v25  ;;  %468 = vmatpush.msrb.mxu2 %v290_v26  ;;  %v296_v62 = vld [vmem:[#allocation5 + $0xb8] sm:$0xff] }
  0x70   : > { %v360_v63 = vld [vmem:[#allocation5 + $0x2b8] sm:$0xff]  ;;  %645 = vmatpush.msrb.mxu0 %v606_v60 }
  0x71   : > { %491 = vmatpush.msrb.mxu3 %v354_v27  ;;  %469 = vmatpush.msrb.mxu2 %v286_v28  ;;  %v292_v1 = vld [vmem:[#allocation5 + $0x98] sm:$0xff] }
  0x72   : > { %v356_v3 = vld [vmem:[#allocation5 + $0x298] sm:$0xff]  ;;  %646 = vmatpush.msrb.mxu0 %v605_v0 }
  0x73   : > { %492 = vmatpush.msrb.mxu3 %v350_v29  ;;  %470 = vmatpush.msrb.mxu2 %v282_v30  ;;  %v288_v5 = vld [vmem:[#allocation5 + $0x78] sm:$0xff] }
  0x74   : > { %v352_v6 = vld [vmem:[#allocation5 + $0x278] sm:$0xff]  ;;  %647 = vmatpush.msrb.mxu0 %v604_v4 }
  0x75   : > { %493 = vmatpush.msrb.mxu3 %v346_v31  ;;  %471 = vmatpush.msrb.mxu2 %v278_v32  ;;  %v284_v8 = vld [vmem:[#allocation5 + $0x58] sm:$0xff] }
  0x76   : > { %v348_v9 = vld [vmem:[#allocation5 + $0x258] sm:$0xff]  ;;  %648 = vmatpush.msrb.mxu0 %v603_v7 }
  0x77   : > { %494 = vmatpush.msrb.mxu3 %v342_v33  ;;  %472 = vmatpush.msrb.mxu2 %v274_v34  ;;  %v602_v10 = vld [vmem:[#allocation8 + $0x38] sm:$0xff]  ;;  %v601_v13 = vld [vmem:[#allocation8 + $0x30] sm:$0xff] }
  0x78   : > { %473 = vmatmul.f32.vlgmr.msrb.gmra.mxu2 %v1407_v61  ;;  %v280_v11 = vld [vmem:[#allocation5 + $0x38] sm:$0xff]  ;;  %649 = vmatpush.msrb.mxu0 %v602_v10 }
  0x79   : > { %495 = vmatpush.msrb.mxu3 %v338_v35  ;;  %549 = vmatpush.msra.mxu2 %v336_v36  ;;  %v344_v12 = vld [vmem:[#allocation5 + $0x238] sm:$0xff]  ;;  %v620_v35 = vld [vmem:[#allocation8 + $0xc8] sm:$0xff] }
  0x7a   : > { %496 = vmatmul.f32.vlgmr.msrb.gmra.mxu3 %v1410_v2  ;;  %v276_v14 = vld [vmem:[#allocation5 + $0x18] sm:$0xff]  ;;  %650 = vmatpush.msrb.mxu0 %v601_v13 }
  0x7b   : > { %572 = vmatpush.msra.mxu3 %v400_v37  ;;  %550 = vmatpush.msra.mxu2 %v332_v38  ;;  %v340_v15 = vld [vmem:[#allocation5 + $0x218] sm:$0xff]  ;;  %v619_v38 = vld [vmem:[#allocation8 + $0xc0] sm:$0xff] }
  0x7c   : > { %651 = vmatpush.msrb.mxu0 %v600_v17  ;;  %v598_v20 = vld [vmem:[#allocation8 + $0x18] sm:$0xff]  ;;  %v597_v21 = vld [vmem:[#allocation8 + $0x10] sm:$0xff] }
  0x7d   : > { %573 = vmatpush.msra.mxu3 %v396_v39  ;;  %551 = vmatpush.msra.mxu2 %v328_v40  ;;  %v626_v24 = vld [vmem:[#allocation8 + $0xf8] sm:$0xff]  ;;  %v625_v25 = vld [vmem:[#allocation8 + $0xf0] sm:$0xff] }
  0x7e   : > { %652 = vmatpush.msrb.mxu0 %v599_v18  ;;  %676 = vmatpush.msrb.mxu1 %v626_v24  ;;  %v622_v29 = vld [vmem:[#allocation8 + $0xd8] sm:$0xff]  ;;  %v621_v30 = vld [vmem:[#allocation8 + $0xd0] sm:$0xff] }
  0x7f   : > { %574 = vmatpush.msra.mxu3 %v392_v41  ;;  %552 = vmatpush.msra.mxu2 %v324_v42  ;;  %v618_v40 = vld [vmem:[#allocation8 + $0xb8] sm:$0xff]  ;;  %v617_v41 = vld [vmem:[#allocation8 + $0xb0] sm:$0xff] }
  0x80   : > { %476 = vmatmul.f32.gmra.mxu2 %v1415_v16  ;;  %653 = vmatpush.msrb.mxu0 %v598_v20  ;;  %v614_v54 = vld [vmem:[#allocation8 + $0x98] sm:$0xff] }
  0x81   : > { %575 = vmatpush.msra.mxu3 %v388_v43  ;;  %553 = vmatpush.msra.mxu2 %v320_v44 }
  0x82   : > { %499 = vmatmul.f32.gmra.mxu3 %v1419_v19  ;;  %654 = vmatpush.msrb.mxu0 %v597_v21 }
  0x83   : > { %576 = vmatpush.msra.mxu3 %v384_v45  ;;  %554 = vmatpush.msra.mxu2 %v316_v46  ;;  %v616_v46 = vld [vmem:[#allocation8 + $0xa8] sm:$0xff] }
  0x84   : > { %655 = vmatpush.msrb.mxu0 %v596_v22  ;;  %677 = vmatpush.msrb.mxu1 %v625_v25 }
  0x85   : > { %577 = vmatpush.msra.mxu3 %v380_v47  ;;  %555 = vmatpush.msra.mxu2 %v312_v49 }
  0x86   : > { %656 = vmatpush.msrb.mxu0 %v595_v23 }
  0x87   : > { %578 = vmatpush.msra.mxu3 %v376_v50  ;;  %556 = vmatpush.msra.mxu2 %v308_v52 }
  0x89   : > { %579 = vmatpush.msra.mxu3 %v372_v53  ;;  %557 = vmatpush.msra.mxu2 %v304_v55  ;;  %v613_v55 = vld [vmem:[#allocation8 + $0x90] sm:$0xff] }
  0x8b   : > { %580 = vmatpush.msra.mxu3 %v368_v56  ;;  %558 = vmatpush.msra.mxu2 %v300_v58  ;;  %v611_v58 = vld [vmem:[#allocation8 + $0x80] sm:$0xff] }
  0x8d   : > { %581 = vmatpush.msra.mxu3 %v364_v59  ;;  %559 = vmatpush.msra.mxu2 %v296_v62 }
  0x8f   : > { %582 = vmatpush.msra.mxu3 %v360_v63  ;;  %560 = vmatpush.msra.mxu2 %v292_v1 }
  0x91   : > { %583 = vmatpush.msra.mxu3 %v356_v3  ;;  %561 = vmatpush.msra.mxu2 %v288_v5 }
  0x93   : > { %584 = vmatpush.msra.mxu3 %v352_v6  ;;  %562 = vmatpush.msra.mxu2 %v284_v8 }
  0x95   : > { %585 = vmatpush.msra.mxu3 %v348_v9  ;;  %563 = vmatpush.msra.mxu2 %v280_v11 }
  0x97   : > { %586 = vmatpush.msra.mxu3 %v344_v12  ;;  %564 = vmatpush.msra.mxu2 %v276_v14 }
  0x98   : > { %565 = vmatmul.f32.vlgmr.msra.gmra.mxu2 %v1407_v61  ;;  %v1434_v61 = vld [vmem:[#allocation7] sm:$0xf] }
  0x99   : > { %587 = vmatpush.msra.mxu3 %v340_v15  ;;  %v403_v26 = vperm.slane %v1434_v61, 0  ;;  %v404_v3 = vperm.slane %v1434_v61, 1  ;;  %v406_v4 = vperm.slane %v1434_v61, 3 }
  0x9a   : > { %588 = vmatmul.f32.vlgmr.msra.gmra.mxu3 %v1410_v2  ;;  %v624_v2 = vld [vmem:[#allocation8 + $0xe8] sm:$0xff] }
  0x9b   : > { %678 = vmatpush.msrb.mxu1 %v624_v2 }
  0xa0   : > { %568 = vmatmul.f32.gmra.mxu2 %v1415_v16  ;;  %v623_v16 = vld [vmem:[#allocation8 + $0xe0] sm:$0xff] }
  0xa1   : > { %679 = vmatpush.msrb.mxu1 %v623_v16 }
  0xa2   : > { %591 = vmatmul.f32.gmra.mxu3 %v1419_v19  ;;  %v405_v19 = vperm.slane %v1434_v61, 2 }
  0xa3   : > { %680 = vmatpush.msrb.mxu1 %v622_v29 }
  0xa5   : > { %681 = vmatpush.msrb.mxu1 %v621_v30 }
  0xa7   : > { %682 = vmatpush.msrb.mxu1 %v620_v35 }
  0xa9   : > { %683 = vmatpush.msrb.mxu1 %v619_v38 }
  0xab   : > { %684 = vmatpush.msrb.mxu1 %v618_v40 }
  0xad   : > { %685 = vmatpush.msrb.mxu1 %v617_v41 }
  0xaf   : > { %686 = vmatpush.msrb.mxu1 %v616_v46 }
  0xb1   : > { %687 = vmatpush.msrb.mxu1 %v615_v51 }
  0xb3   : > { %688 = vmatpush.msrb.mxu1 %v614_v54 }
  0xb5   : > { %689 = vmatpush.msrb.mxu1 %v613_v55 }
  0xb7   : > { %690 = vmatpush.msrb.mxu1 %v612_v57 }
  0xb9   : > { %691 = vmatpush.msrb.mxu1 %v611_v58 }
  0xd9   : > { %v520_v31 = vpop.f32.mrf.mxu0 }
  0xda   : > { %v521_v33 = vadd.f32 %v520_v31, %v405_v19 }
  0xdb   : > { %v543_v36 = vpop.f32.mrf.mxu1 }
  0xdc   : > { %v544_v37 = vadd.f32 %v543_v36, %v521_v33 }
  0xdd   : > { %v428_v27 = vpop.f32.mrf.mxu2  ;;  %v451_v32 = vpop.f32.mrf.mxu3 }
  0xde   : > { %v429_v28 = vadd.f32 %v428_v27, %v403_v26  ;;  %v637_v59 = vmul.f32 %v544_v37, %v544_v37 }
  0xe0   : > { %v452_v34 = vadd.f32 %v451_v32, %v429_v28 }
  0xe1   : > { %v523_v43 = vpop.f32.mrf.mxu0 }
  0xe2   : > { %v629_v39 = vmul.f32 %v544_v37, %v452_v34  ;;  %v524_v45 = vadd.f32 %v523_v43, %v405_v19  ;;  %v633_v53 = vmul.f32 %v452_v34, %v452_v34 }
  0xe3   : > { %v546_v48 = vpop.f32.mrf.mxu1 }
  0xe4   : > { %657 = vmatmul.f32.vlgmr.msrb.gmra.mxu0 %v629_v39  ;;  %v547_v50 = vadd.f32 %v546_v48, %v524_v45 }
  0xe5   : > { %v431_v42 = vpop.f32.mrf.mxu2  ;;  %v454_v47 = vpop.f32.mrf.mxu3 }
  0xe6   : > { %v432_v44 = vadd.f32 %v431_v42, %v403_v26  ;;  %v639_v63 = vmul.f32 %v547_v50, %v547_v50 }
  0xe8   : > { %v455_v49 = vadd.f32 %v454_v47, %v432_v44 }
  0xea   : > { %v631_v52 = vmul.f32 %v547_v50, %v455_v49  ;;  %v635_v56 = vmul.f32 %v455_v49, %v455_v49 }
  0xec   : > { %660 = vmatmul.f32.gmra.mxu0 %v631_v52 }
  0xf4   : > { %663 = vmatmul.f32.gmra.mxu0 %v633_v53 }
  0xfb   : > { %v474_v60 = vpop.f32.mrf.mxu2 }
  0xfc   : > { %666 = vmatmul.f32.gmra.mxu0 %v635_v56  ;;  %v475_v5 = vadd.f32 %v474_v60, %v404_v3 }
  0xfd   : > { %v497_v62 = vpop.f32.mrf.mxu3 }
  0xfe   : > { %v498_v9 = vadd.f32 %v497_v62, %v475_v5 }
 0x100   : > { %v634_v21 = vmul.f32 %v498_v9, %v498_v9 }
 0x103   : > { %v477_v0 = vpop.f32.mrf.mxu2 }
 0x104   : > { %669 = vmatmul.f32.gmra.mxu0 %v637_v59  ;;  %v478_v12 = vadd.f32 %v477_v0, %v404_v3 }
 0x105   : > { %v500_v1 = vpop.f32.mrf.mxu3 }
 0x106   : > { %v501_v17 = vadd.f32 %v500_v1, %v478_v12 }
 0x108   : > { %v636_v22 = vmul.f32 %v501_v17, %v501_v17 }
 0x10c   : > { %672 = vmatmul.f32.gmra.mxu0 %v639_v63 }
 0x11b   : > { %v566_v6 = vpop.f32.mrf.mxu2 }
 0x11c   : > { %v567_v8 = vadd.f32 %v566_v6, %v406_v4 }
 0x11d   : > { %v589_v7 = vpop.f32.mrf.mxu3 }
 0x11e   : > { %v590_v10 = vadd.f32 %v589_v7, %v567_v8 }
 0x120   : > { %v630_v11 = vmul.f32 %v590_v10, %v498_v9  ;;  %v638_v23 = vmul.f32 %v590_v10, %v590_v10 }
 0x122   : > { %692 = vmatmul.f32.vlgmr.msrb.gmra.mxu1 %v630_v11 }
 0x123   : > { %v569_v13 = vpop.f32.mrf.mxu2 }
 0x124   : > { %v570_v15 = vadd.f32 %v569_v13, %v406_v4  ;;  %v627_v4 = vlaneseq }
 0x125   : > { %v592_v14 = vpop.f32.mrf.mxu3 }
 0x126   : > { %v593_v18 = vadd.f32 %v592_v14, %v570_v15  ;;  %v628_v11 = vand.u32 127, %v627_v4 }
 0x128   : > { %v632_v20 = vmul.f32 %v593_v18, %v501_v17  ;;  %v640_v24 = vmul.f32 %v593_v18, %v593_v18  ;;  %vm759_vm12 = vcmp.lt.s32.totalorder %v628_v11, 8 }
 0x12a   : > { %695 = vmatmul.f32.gmra.mxu1 %v632_v20 }
 0x132   : > { %698 = vmatmul.f32.gmra.mxu1 %v634_v21 }
 0x13a   : > { %701 = vmatmul.f32.gmra.mxu1 %v636_v22 }
 0x142   : > { %704 = vmatmul.f32.gmra.mxu1 %v638_v23 }
 0x14a   : > { %707 = vmatmul.f32.gmra.mxu1 %v640_v24 }
 0x161   : > { %v658_v25 = vpop.f32.mrf.mxu0 }
 0x169   : > { %v661_v2 = vpop.f32.mrf.mxu0 }
 0x171   : > { %v664_v16 = vpop.f32.mrf.mxu0 }
 0x179   : > { %v667_v28 = vpop.f32.mrf.mxu0 }
 0x181   : > { %v670_v32 = vpop.f32.mrf.mxu0 }
 0x189   : > { %v673_v40 = vpop.f32.mrf.mxu0 }
 0x19f   : > { %v693_v61 = vpop.f32.mrf.mxu1 }
 0x1a0   : > { %v694_v59 = vadd.f32 %v693_v61, %v658_v25 }
 0x1a7   : > { %v696_v26 = vpop.f32.mrf.mxu1 }
 0x1a8   : > { %v697_v10 = vadd.f32 %v696_v26, %v661_v2 }
 0x1af   : > { %v699_v19 = vpop.f32.mrf.mxu1 }
 0x1b0   : > { %v700_v27 = vadd.f32 %v699_v19, %v664_v16 }
 0x1b2   : > { %v735_v29 = vmax.f32 %v700_v27, 1e-16 }
 0x1b4   : > { %1029 = vrsqrt.f32 %v735_v29  ;;  %vm743_vm4 = vweird.f32 %v735_v29 }
 0x1b7   : > { %v702_v30 = vpop.f32.mrf.mxu1 }
 0x1b8   : > { %v703_v31 = vadd.f32 %v702_v30, %v667_v28 }
 0x1ba   : > { %v736_v33 = vmax.f32 %v703_v31, 1e-16  ;;  %v1030_v34 = vpop.eup %1029 }
 0x1bb   : > { %v738_v37 = vmul.f32 %v1030_v34, %v735_v29  ;;  %vm744_vm1 = vweird.f32 %v1030_v34 }
 0x1bc   : > { %1031 = vrsqrt.f32 %v736_v33  ;;  %vm745_vm5 = vmor %vm743_vm4, %vm744_vm1  ;;  %vm753_vm10 = vweird.f32 %v736_v33 }
 0x1bd   : > { %v739_v39 = vmul.f32 %v1030_v34, %v738_v37 }
 0x1bf   : > { %v705_v35 = vpop.f32.mrf.mxu1  ;;  %v740_v45 = vmul.f32 0.5, %v739_v39 }
 0x1c0   : > { %v706_v36 = vadd.f32 %v705_v35, %v670_v32 }
 0x1c1   : > { %v741_v50 = vsub.f32 1.5, %v740_v45 }
 0x1c2   : > { %v711_v38 = vmax.f32 %v706_v36, 1e-16  ;;  %v1032_v42 = vpop.eup %1031 }
 0x1c3   : > { %v748_v47 = vmul.f32 %v1032_v42, %v736_v33  ;;  %v742_v55 = vmul.f32 %v1030_v34, %v741_v50  ;;  %vm754_vm7 = vweird.f32 %v1032_v42 }
 0x1c4   : > { %1033 = vrsqrt.f32 %v711_v38  ;;  %vm719_vm2 = vweird.f32 %v711_v38  ;;  %vm755_vm11 = vmor %vm753_vm10, %vm754_vm7 }
 0x1c5   : > { %v749_v51 = vmul.f32 %v1032_v42, %v748_v47  ;;  %v746_v0 = vsel %vm745_vm5, %v1030_v34, %v742_v55 }
 0x1c7   : > { %v708_v41 = vpop.f32.mrf.mxu1  ;;  %v750_v56 = vmul.f32 0.5, %v749_v51 }
 0x1c8   : > { %v709_v43 = vadd.f32 %v708_v41, %v673_v40 }
 0x1c9   : > { %v751_v1 = vsub.f32 1.5, %v750_v56 }
 0x1ca   : > { %v1034_v44 = vpop.eup %1033  ;;  %v712_v46 = vmax.f32 %v709_v43, 1e-16 }
 0x1cb   : > { %v714_v48 = vmul.f32 %v1034_v44, %v711_v38  ;;  %vm720_vm0 = vweird.f32 %v1034_v44  ;;  %v752_v8 = vmul.f32 %v1032_v42, %v751_v1 }
 0x1cc   : > { %1035 = vrsqrt.f32 %v712_v46  ;;  %vm721_vm3 = vmor %vm719_vm2, %vm720_vm0  ;;  %vm729_vm8 = vweird.f32 %v712_v46 }
 0x1cd   : > { %v715_v49 = vmul.f32 %v1034_v44, %v714_v48  ;;  %v756_v14 = vsel %vm755_vm11, %v1032_v42, %v752_v8 }
 0x1cf   : > { %v716_v52 = vmul.f32 0.5, %v715_v49 }
 0x1d1   : > { %v717_v53 = vsub.f32 1.5, %v716_v52 }
 0x1d2   : > { %v1036_v54 = vpop.eup %1035 }
 0x1d3   : > { %v718_v57 = vmul.f32 %v1034_v44, %v717_v53  ;;  %v724_v58 = vmul.f32 %v1036_v54, %v712_v46  ;;  %vm730_vm6 = vweird.f32 %v1036_v54 }
 0x1d4   : > { %vm731_vm9 = vmor %vm729_vm8, %vm730_vm6 }
 0x1d5   : > { %v722_v60 = vsel %vm721_vm3, %v1034_v44, %v718_v57  ;;  %v725_v62 = vmul.f32 %v1036_v54, %v724_v58 }
 0x1d6   : > { %v733_v63 = vmul.f32 %v722_v60, %v694_v59 }
 0x1d7   : > { %v726_v3 = vmul.f32 0.5, %v725_v62 }
 0x1d8   : > { %v757_v5 = vmul.f32 %v746_v0, %v733_v63 }
 0x1d9   : > { %v727_v6 = vsub.f32 1.5, %v726_v3 }
 0x1da   : > { %v760_v7 = vmul.f32 1.442695, %v757_v5 }
 0x1db   : > { %v728_v9 = vmul.f32 %v1036_v54, %v727_v6 }
 0x1dc   : > { %1037 = vpow2.f32 %v760_v7 }
 0x1dd   : > { %v732_v12 = vsel %vm731_vm9, %v1036_v54, %v728_v9 }
 0x1de   : > { %v734_v13 = vmul.f32 %v732_v12, %v697_v10 }
 0x1e0   : > { %v758_v15 = vmul.f32 %v756_v14, %v734_v13 }
 0x1e2   : > { %v1038_v17 = vpop.eup %1037  ;;  %v762_v18 = vmul.f32 1.442695, %v758_v15 }
 0x1e3   : > { %v764_v20 = vsel %vm759_vm12, %v1038_v17, 0.0 }
 0x1e4   : > { %766 = vadd.xlane.f32.xlu0 %v764_v20  ;;  %1039 = vpow2.f32 %v762_v18 }
 0x1ea   : > { %v1040_v21 = vpop.eup %1039 }
 0x1eb   : > { %v765_v22 = vsel %vm759_vm12, %v1040_v21, 0.0 }
 0x1ec   : > { %768 = vadd.xlane.f32.xlu0 %v765_v22 }
 0x257   : > { %v767_v23 = vpop.xlane.xlu0 %766 }
 0x258   : > { %1041 = vrcp.f32 %v767_v23  ;;  %v781_v26 = vand.u32 2147483648, %v767_v23  ;;  %v779_v19 = vand.u32 2147483647, %v767_v23  ;;  %vm775_vm14 = vweird.f32 %v767_v23 }
 0x25a   : > { %v782_v29 = vor.u32 1.1754944e-38, %v781_v26  ;;  %vm780_vm0 = vcmp.eq.f32.partialorder %v779_v19, 8.507059e+37 }
 0x25e   : > { %v1042_v24 = vpop.eup %1041 }
 0x25f   : > { %v771_v25 = vmul.f32 %v1042_v24, %v767_v23  ;;  %v769_v61 = vpop.xlane.xlu0 %768  ;;  %vm776_vm13 = vweird.f32 %v1042_v24 }
 0x260   : > { %1043 = vrcp.f32 %v769_v61  ;;  %vm777_vm15 = vmor %vm775_vm14, %vm776_vm13  ;;  %v795_v35 = vand.u32 2147483648, %v769_v61  ;;  %v793_v37 = vand.u32 2147483647, %v769_v61  ;;  %vm789_vm2 = vweird.f32 %v769_v61 }
 0x261   : > { %v772_v2 = vsub.f32 1.0, %v771_v25 }
 0x262   : > { %v796_v39 = vor.u32 1.1754944e-38, %v795_v35  ;;  %vm794_vm4 = vcmp.eq.f32.partialorder %v793_v37, 8.507059e+37 }
 0x263   : > { %v773_v16 = vmul.f32 %v1042_v24, %v772_v2 }
 0x265   : > { %v774_v27 = vadd.f32 %v1042_v24, %v773_v16 }
 0x266   : > { %v1044_v28 = vpop.eup %1043 }
 0x267   : > { %v778_v30 = vsel %vm777_vm15, %v1042_v24, %v774_v27  ;;  %v785_v31 = vmul.f32 %v1044_v28, %v769_v61  ;;  %vm790_vm1 = vweird.f32 %v1044_v28 }
 0x268   : > { %v783_v32 = vsel %vm780_vm0, %v782_v29, %v778_v30  ;;  %vm791_vm3 = vmor %vm789_vm2, %vm790_vm1 }
 0x269   : > { %v798_v33 = vmul.f32 %v783_v32, %v764_v20  ;;  %v786_v34 = vsub.f32 1.0, %v785_v31 }
 0x26b   : > { %v787_v36 = vmul.f32 %v1044_v28, %v786_v34  ;;  %800 = vst [vmem:[%s266_s20] sm:$0xff] %v798_v33 }
 0x26d   : > { %v788_v38 = vadd.f32 %v1044_v28, %v787_v36 }
 0x26f   : > { %v792_v40 = vsel %vm791_vm3, %v1044_v28, %v788_v38 }
 0x270   : > { %v797_v41 = vsel %vm794_vm4, %v796_v39, %v792_v40 }
 0x271   : > { %v799_v42 = vmul.f32 %v797_v41, %v765_v22 }
 0x273   : > { %801 = vst [vmem:[%s266_s20 + $0x8] sm:$0xff] %v799_v42 }
 0x274   : > { %1192 = shalt.err (!%p1189_p10)
}
 0x275   : > { %s1250_s10 = smov 128   ;;  %s1251_s24 = smov 8  }
 0x276   : > { %958 = dma.vmem_to_hbm [thread:$0]  (%p1360_p7), %s816_s27, 256, %s818_s28, %s803_s19, %s1250_s10, %s1250_s10, %s1251_s24  }
 0x277 PF: > { %s832_s21 = sand.u32 1, %s1227_s15   ;;  %p1485_p12 = scmp.ge.s32.totalorder %s1239_s18, 2 }
 0x278   : > { %s833_s26 = scalar_lea.sflag [#allocation4], %s832_s21 }
 0x279   : > { %p975_p13 = pnand %p1485_p12, %p1312_p6 }
 0x27b   : > { %p976_p0 = pneg %p975_p13 }
 0x27d   : > { %1222 = dma.done.wait (%p976_p0), %s833_s26, 256  }
 0x27e   : > { %1224 = vsyncadd (%p976_p0), %s833_s26, 4294967040  ;;  %p19_p3 = scmp.ge.s32.totalorder %s1346_s25, 4   ;;  %s1486_s15 = smov %s1231_s16 }
 0x27f   : > { %s1487_s16 = smov %s1235_s17  ;;  %s1488_s17 = smov %s1356_s30 }
 0x280   : > { %s1489_s18 = smov %s1346_s25  ;;  %21 = sbr.rel (!%p19_p3) target bundleno = 7 (0x7), region = 93 }
 0x285   :  { %839 = vsyncpa [#allocation3], 1 }
 0x286   :  { %841 = vsyncpa [#allocation3 + $0x1], 1 }
 0x287   :  { %842 = vsyncpa [#allocation6], 1 }
 0x288   :  { %843 = vsyncpa [#allocation9], 1 }
 0x289   :  { %844 = vsyncpa [#allocation4], 1 }
 0x28a   :  { %846 = vsyncpa [#allocation4 + $0x1], 1 }

</bundles_post_ra>
